<compile_context>
chip_gen: v7x
topology: tpu7x:2x2x1
jax: 0.10.0
libtpu: 0.0.40
codegen_flags: <defaults>
</compile_context>

<pallas_src>
import functools

import jax
import jax.numpy as jnp
from jax import lax
from jax.experimental import pallas as pl
from jax.experimental.pallas import tpu as pltpu

# Small shapes consistent with the module's forward pass.
T = 8        # sequence length (n_tokens)
D_IN = 32    # d_in
D_OUT = 32   # d_out


# ---------------------------------------------------------------------------
# Kernel: whole problem in VMEM, single invocation, no grid.
# ---------------------------------------------------------------------------
def _self_attention_kernel(x_ref, w_qkv_ref, o_ref, *, d_out):
    x = x_ref[...]                                                # (T, d_in)

    # Softmax temperature folded into q (reference divides scores by
    # sqrt(keys.shape[-1]) == sqrt(d_out)).
    scale = 1.0 / (d_out ** 0.5)

    # Three tiny MXU pushes against static ref slices of the pre-fused
    # (d_in, 3*d_out) weight.  Each projection result starts at lane 0, so
    # no lane-offset slicing of a computed 96-lane value is needed.
    q = jnp.dot(x, w_qkv_ref[:, 0:d_out],
                preferred_element_type=jnp.float32) * scale       # (T, d_out)
    k = jnp.dot(x, w_qkv_ref[:, d_out:2 * d_out],
                preferred_element_type=jnp.float32)               # (T, d_out)
    v = jnp.dot(x, w_qkv_ref[:, 2 * d_out:3 * d_out],
                preferred_element_type=jnp.float32)               # (T, d_out)

    # scores = q @ k^T, expressed as a contraction of the feature dims so no
    # explicit transpose of k goes through the XLU.
    s = lax.dot_general(q, k, (((1,), (1,)), ((), ())),
                        preferred_element_type=jnp.float32)       # (T, T)

    # Numerically-stable softmax over the key axis (torch dim=1 on a 2-D
    # score matrix).  Exact divide: negligible cost at this size and avoids
    # the approx-reciprocal error flagged in review.
    m = jnp.max(s, axis=-1, keepdims=True)
    p = jnp.exp(s - m)
    denom = jnp.sum(p, axis=-1, keepdims=True)
    p = p / denom

    ctx = jnp.dot(p, v, preferred_element_type=jnp.float32)       # (T, d_out)
    o_ref[...] = ctx.astype(o_ref.dtype)
    # Output last dim is d_out=32 (<128 lanes) so the final store is a single
    # masked vst; a lane-dense relayout is not worth it at one (8, 32) tile.


# ---------------------------------------------------------------------------
# Parameter-setup-time weight fusion (NOT in the per-call path).
# ---------------------------------------------------------------------------
def fuse_qkv_weights(wq, wk, wv):
    return jnp.concatenate([wq, wk, wv], axis=1)     # (d_in, 3*d_out)


# ---------------------------------------------------------------------------
# Wrapper: no grid, whole arrays as VMEM blocks.
# ---------------------------------------------------------------------------
@jax.jit
def self_attention(x, w_qkv):
    t, _ = x.shape
    d_out = w_qkv.shape[1] // 3

    kernel = functools.partial(_self_attention_kernel, d_out=d_out)

    return pl.pallas_call(
        kernel,
        out_shape=jax.ShapeDtypeStruct((t, d_out), x.dtype),
        in_specs=[
            pl.BlockSpec(memory_space=pltpu.MemorySpace.VMEM),    # x
            pl.BlockSpec(memory_space=pltpu.MemorySpace.VMEM),    # fused W_qkv
        ],
        out_specs=pl.BlockSpec(memory_space=pltpu.MemorySpace.VMEM),
    )(x, w_qkv)


# ---------------------------------------------------------------------------
# Pure-JAX reference (mirrors the PyTorch forward exactly).
# ---------------------------------------------------------------------------
def reference_self_attention(x, wq, wk, wv):
    hp = jax.lax.Precision.HIGHEST
    q = jnp.dot(x, wq, precision=hp)
    k = jnp.dot(x, wk, precision=hp)
    v = jnp.dot(x, wv, precision=hp)
    scores = jnp.dot(q, k.T, precision=hp)
    weights = jax.nn.softmax(scores / k.shape[-1] ** 0.5, axis=1)
    return jnp.dot(weights, v, precision=hp)


if __name__ == "__main__":
    key = jax.random.PRNGKey(0)
    kx, kq, kk, kv = jax.random.split(key, 4)

    x = jax.random.normal(kx, (T, D_IN), dtype=jnp.float32)
    wq = jax.random.normal(kq, (D_IN, D_OUT), dtype=jnp.float32) * 0.1
    wk = jax.random.normal(kk, (D_IN, D_OUT), dtype=jnp.float32) * 0.1
    wv = jax.random.normal(kv, (D_IN, D_OUT), dtype=jnp.float32) * 0.1

    # Fuse once at setup time; the jitted call path sees a single weight arg.
    w_qkv = jax.block_until_ready(fuse_qkv_weights(wq, wk, wv))

    out = self_attention(x, w_qkv)
    out = jax.block_until_ready(out)

    ref = reference_self_attention(x, wq, wk, wv)
    assert out.shape == (T, D_OUT)
    assert jnp.allclose(out, ref, atol=1e-3, rtol=1e-3), "mismatch vs reference"

    print("KERNEL_OK")
</pallas_src>

<mosaic_0001>
module attributes {stable_mosaic.version = 11 : i64} {
  func.func @_self_attention_kernel(%arg0: memref<8x32xf32, #tpu.memory_space<vmem>>, %arg1: memref<32x96xf32, #tpu.memory_space<vmem>>, %arg2: memref<8x32xf32, #tpu.memory_space<vmem>>) attributes {dimension_semantics = [], scalar_prefetch = 0 : i64, scratch_operands = 0 : i64, tpu.core_type = #tpu.core_type<tc>} {
    %c0 = arith.constant 0 : index
    %c0_0 = arith.constant 0 : index
    %0 = vector.load %arg0[%c0, %c0_0] : memref<8x32xf32, #tpu.memory_space<vmem>>, vector<8x32xf32>
    %c0_1 = arith.constant 0 : index
    %c0_2 = arith.constant 0 : index
    %1 = vector.load %arg1[%c0_1, %c0_2] : memref<32x96xf32, #tpu.memory_space<vmem>>, vector<32x32xf32>
    %cst = arith.constant dense<0.000000e+00> : vector<8x32xf32>
    %2 = tpu.matmul %0, %1, %cst {dimension_numbers = #tpu.dot_dimension_numbers<[1], [0], [0], [1], [0, 0, 1, 1], [], []>} : vector<8x32xf32>, vector<32x32xf32>, vector<8x32xf32> -> vector<8x32xf32>
    %cst_3 = arith.constant 0.176776692 : f32
    %3 = vector.broadcast %cst_3 : f32 to vector<8x32xf32>
    %4 = arith.mulf %2, %3 : vector<8x32xf32>
    %c0_4 = arith.constant 0 : index
    %c32 = arith.constant 32 : index
    %5 = vector.load %arg1[%c0_4, %c32] : memref<32x96xf32, #tpu.memory_space<vmem>>, vector<32x32xf32>
    %cst_5 = arith.constant dense<0.000000e+00> : vector<8x32xf32>
    %6 = tpu.matmul %0, %5, %cst_5 {dimension_numbers = #tpu.dot_dimension_numbers<[1], [0], [0], [1], [0, 0, 1, 1], [], []>} : vector<8x32xf32>, vector<32x32xf32>, vector<8x32xf32> -> vector<8x32xf32>
    %c0_6 = arith.constant 0 : index
    %c64 = arith.constant 64 : index
    %7 = vector.load %arg1[%c0_6, %c64] : memref<32x96xf32, #tpu.memory_space<vmem>>, vector<32x32xf32>
    %cst_7 = arith.constant dense<0.000000e+00> : vector<8x32xf32>
    %8 = tpu.matmul %0, %7, %cst_7 {dimension_numbers = #tpu.dot_dimension_numbers<[1], [0], [0], [1], [0, 0, 1, 1], [], []>} : vector<8x32xf32>, vector<32x32xf32>, vector<8x32xf32> -> vector<8x32xf32>
    %cst_8 = arith.constant dense<0.000000e+00> : vector<8x8xf32>
    %9 = tpu.matmul %4, %6, %cst_8 {dimension_numbers = #tpu.dot_dimension_numbers<[1], [1], [0], [0], [0, 0, 1, 0], [], []>} : vector<8x32xf32>, vector<8x32xf32>, vector<8x8xf32> -> vector<8x8xf32>
    %cst_9 = arith.constant dense<0xFF800000> : vector<8xf32>
    %10 = vector.multi_reduction <maximumf>, %9, %cst_9 [1] : vector<8x8xf32> to vector<8xf32>
    %11 = vector.shape_cast %10 : vector<8xf32> to vector<8x1xf32>
    %12 = vector.broadcast %11 : vector<8x1xf32> to vector<8x8xf32>
    %13 = arith.subf %9, %12 : vector<8x8xf32>
    %14 = math.exp %13 : vector<8x8xf32>
    %cst_10 = arith.constant dense<0.000000e+00> : vector<8xf32>
    %15 = vector.multi_reduction <add>, %14, %cst_10 [1] : vector<8x8xf32> to vector<8xf32>
    %16 = vector.shape_cast %15 : vector<8xf32> to vector<8x1xf32>
    %17 = vector.broadcast %16 : vector<8x1xf32> to vector<8x8xf32>
    %18 = arith.divf %14, %17 : vector<8x8xf32>
    %cst_11 = arith.constant dense<0.000000e+00> : vector<8x32xf32>
    %19 = tpu.matmul %18, %8, %cst_11 {dimension_numbers = #tpu.dot_dimension_numbers<[1], [0], [0], [1], [0, 0, 1, 1], [], []>} : vector<8x8xf32>, vector<8x32xf32>, vector<8x32xf32> -> vector<8x32xf32>
    %c0_12 = arith.constant 0 : index
    %c0_13 = arith.constant 0 : index
    %20 = vector.load %arg2[%c0_12, %c0_13] : memref<8x32xf32, #tpu.memory_space<vmem>>, vector<8x32xf32>
    tpu.vector_store %arg2[%c0_12, %c0_13], %19 {strides = array<i32>} : memref<8x32xf32, #tpu.memory_space<vmem>>, vector<8x32xf32>,
    return
  }
}

</mosaic_0001>

<bundles_post_ra>
// kernel: self_attention.1
= control target key start
LH: loop header
LB: loop body
LE: loop exit
PB: predicated region body
PF: predicated region fallthrough
CT: control target
= control target key end

     0   :  { %7 = vsyncpa [#allocation3], 0  ;;  %s738_s0 = inlined_call_operand.hbm [shape: f32[8,32], index: 0, kind: input, shape index: {}]   ;;  %s739_s1 = inlined_call_operand.hbm [shape: f32[32,96], index: 1, kind: input, shape index: {}]   ;;  %s740_s2 = inlined_call_operand.hbm [shape: f32[8,32], index: 2, kind: output, shape index: {}]  }
   0x1   :  { %8 = vsyncpa [#allocation6], 0 }
   0x2   :  { %9 = vsyncpa [#allocation4], 0  ;;  %s656_s9 = smov [#allocation2]   ;;  %s657_s11 = smov [#allocation5]  }
   0x3   :  { %s16_s10 = sshll.u32 %s656_s9, 4  ;;  %s25_s12 = sshll.u32 %s657_s11, 4  ;;  %s17_s10 = int_to_ptr.vmem [resolvable:$true] %s16_s10  ;;  %s681_s12 = int_to_ptr.vmem [resolvable:$true] %s25_s12 }
   0x4   :  { %s584_s15 = scalar_lea.hbm %s738_s0, 128 }
   0x5   :  { %p585_p0 = scmp.ne.s32.totalorder %s738_s0, %s584_s15  ;;  %p588_p1 = scmp.lt.u32.totalorder %s584_s15, %s738_s0 }
   0x7   :  { %p590_p2 = pnand %p588_p1, %p585_p0 }
   0x9   :  { %593 = shalt.err (!%p590_p2)
}
   0xa   :  { %s594_s20 = scalar_lea.vmem %s17_s10, 128  ;;  %p599_p4 = scmp.lt.s32.totalorder %s17_s10, %s17_s10 }
   0xb   :  { %p595_p3 = scmp.ne.s32.totalorder %s17_s10, %s594_s20  ;;  %p600_p5 = scmp.lt.s32.totalorder %s594_s20, %s594_s20 }
   0xd   :  { %p601_p6 = por %p600_p5, %p599_p4 }
   0xf   :  { %p602_p7 = pnand %p601_p6, %p595_p3 }
  0x11   :  { %605 = shalt.err (!%p602_p7)
}
  0x12   :  { %19 = dma.hbm_to_vmem [thread:$0]  %s738_s0, 128, %s17_s10, [#allocation3]  }
  0x13   :  { %s606_s25 = scalar_lea.hbm %s739_s1, 512 }
  0x14   :  { %p607_p8 = scmp.ne.s32.totalorder %s739_s1, %s606_s25  ;;  %p610_p9 = scmp.lt.u32.totalorder %s606_s25, %s739_s1 }
  0x16   :  { %p612_p10 = pnand %p610_p9, %p607_p8 }
  0x18   :  { %615 = shalt.err (!%p612_p10)
}
  0x19   :  { %s616_s30 = scalar_lea.vmem %s681_s12, 512  ;;  %p621_p12 = scmp.lt.s32.totalorder %s681_s12, %s681_s12 }
  0x1a   :  { %p617_p11 = scmp.ne.s32.totalorder %s681_s12, %s616_s30  ;;  %p622_p13 = scmp.lt.s32.totalorder %s616_s30, %s616_s30 }
  0x1c   :  { %p623_p0 = por %p622_p13, %p621_p12 }
  0x1e   :  { %p624_p1 = pnand %p623_p0, %p617_p11 }
  0x20   :  { %627 = shalt.err (!%p624_p1)
}
  0x21   :  { %s658_s0 = smov 128   ;;  %s659_s3 = smov 8  }
  0x22   :  { %31 = dma.hbm_to_vmem [thread:$0]  %s739_s1, 512, %s681_s12, [#allocation6], %s658_s0, %s658_s0, %s659_s3  }
  0x23   :  { %650 = dma.done.wait [#allocation3], 128  }
  0x24   :  { %651 = vsyncadd [#allocation3], 4294967168 }
  0x25   :  { %652 = dma.done.wait [#allocation6], 512  }
  0x26   :  { %653 = vsyncadd [#allocation6], 4294966784  ;;  %v660_v0 = vmov 0.0|0.0   ;;  %vm661_vm0 = vmmov 0   ;;  %v662_v1 = vmov 0.0   ;;  %v39_v2 = vld [vmem:[#allocation5] sm:$0xff] }
  0x27   :  { %538 = vmatprep.subr.bf16.mxu1 %v660_v0  ;;  %532 = vmatprep.subr.bf16.mxu0 %v660_v0  ;;  %v40_v3 = vld [vmem:[#allocation5 + $0x8] sm:$0xff]  ;;  %v41_v4 = vld [vmem:[#allocation5 + $0x10] sm:$0xff]  ;;  %v42_v6 = vld [vmem:[#allocation5 + $0x18] sm:$0xff]  ;;  %s663_s1 = smov 96   ;;  %vm43_vm1 = vcmask 261120   ;;  %s664_s6 = smov 64  }
  0x28   :  { %508 = vmatprep.mubr.msk.f32.mxu1 %vm661_vm0, %v662_v1  ;;  %497 = vmatprep.mubr.msk.f32.mxu0 %vm661_vm0, %v662_v1  ;;  %v560_v5 = vpack.i.bf16 %v40_v3, %v39_v2  ;;  %v533_v7 = vpack.c.bf16 %v40_v3, %v39_v2  ;;  %v565_v8 = vpack.i.bf16 %v42_v6, %v41_v4  ;;  %v38_v10 = vld [vmem:[#allocation2] sm:$0xff]  ;;  %vm362_vm2 = vcmask 64512   ;;  %s665_s7 = smov [#allocation7]  }
  0x29   :  { %v536_v9 = vpack.c.bf16 %v42_v6, %v41_v4  ;;  %s454_s8 = sshll.u32 %s665_s7, 4  ;;  %s455_s8 = int_to_ptr.vmem [resolvable:$true] %s454_s8 }
  0x2a   :  { %561 = vrot.lane.b32.xlu0 %v560_v5, %s663_s1  ;;  %534 = vmatpush3.bf16.msra.mxu0 %v533_v7  ;;  %s628_s9 = scalar_lea.vmem %s455_s8, 128  ;;  %p633_p3 = scmp.lt.s32.totalorder %s455_s8, %s455_s8 }
  0x2b   :  { %535 = vmatprep.subr.bf16.mxu0 %v660_v0  ;;  %571 = vrot.lane.b32.xlu1 %v560_v5, %s664_s6  ;;  %p629_p2 = scmp.ne.s32.totalorder %s455_s8, %s628_s9  ;;  %p634_p4 = scmp.lt.s32.totalorder %s628_s9, %s628_s9 }
  0x2d   :  { %p635_p5 = por %p634_p4, %p633_p3 }
  0x2e   :  { %566 = vrot.lane.b32.xlu0 %v565_v8, %s663_s1  ;;  %537 = vmatpush3.bf16.msra.mxu0 %v536_v9 }
  0x2f   :  { %544 = vmatprep.subr.bf16.mxu0 %v660_v0  ;;  %576 = vrot.lane.b32.xlu1 %v565_v8, %s664_s6  ;;  %p636_p6 = pnand %p635_p5, %p629_p2 }
  0x31   :  { %498 = vmatmul.mubr.msk.f32.vlgmr.msra.gmra.mrb[0].mxu0 %vm43_vm1, %v38_v10 }
  0x32   :  { %519 = vmatprep.mubr.msk.f32.mxu0 %vm661_vm0, %v662_v1 }
  0x9c   :  { %v562_v11 = vpop.permute.xlu0 %561 }
  0x9d   :  { %v564_v12 = vunpack.i.h.bf16 %v562_v11  ;;  %v563_v13 = vunpack.i.l.bf16 %v562_v11  ;;  %v572_v24 = vpop.permute.xlu1 %571 }
  0x9e   :  { %v574_v25 = vunpack.i.h.bf16 %v572_v24  ;;  %v573_v26 = vunpack.i.l.bf16 %v572_v24 }
  0x9f   :  { %v539_v14 = vpack.c.bf16 %v564_v12, %v563_v13 }
  0xa0   :  { %v567_v15 = vpop.permute.xlu0 %566  ;;  %v545_v27 = vpack.c.bf16 %v574_v25, %v573_v26 }
  0xa1   :  { %v569_v16 = vunpack.i.h.bf16 %v567_v15  ;;  %v568_v17 = vunpack.i.l.bf16 %v567_v15  ;;  %540 = vmatpush3.bf16.msra.mxu1 %v539_v14  ;;  %v577_v28 = vpop.permute.xlu1 %576 }
  0xa2   :  { %541 = vmatprep.subr.bf16.mxu1 %v660_v0  ;;  %v579_v29 = vunpack.i.h.bf16 %v577_v28  ;;  %v578_v30 = vunpack.i.l.bf16 %v577_v28  ;;  %546 = vmatpush3.bf16.msra.mxu0 %v545_v27 }
  0xa3   :  { %v542_v18 = vpack.c.bf16 %v569_v16, %v568_v17  ;;  %547 = vmatprep.subr.bf16.mxu0 %v660_v0 }
  0xa4   :  { %v548_v31 = vpack.c.bf16 %v579_v29, %v578_v30 }
  0xa5   :  { %543 = vmatpush3.bf16.msra.mxu1 %v542_v18 }
  0xa6   :  { %522 = vmatprep.subr.mxu1 %v662_v1  ;;  %549 = vmatpush3.bf16.msra.mxu0 %v548_v31 }
  0xa8   :  { %509 = vmatmul.mubr.msk.f32.vlgmr.msra.gmra.mrb[0].mxu1 %vm43_vm1, %v38_v10 }
  0xa9   :  { %524 = vmatprep.mubr.msk.f32.mxu1 %vm661_vm0, %v662_v1  ;;  %520 = vmatmul.mubr.msk.f32.vlgmr.msra.gmra.mrb[2].mxu0 %vm43_vm1, %v38_v10 }
 0x104   :  { %v113_v19 = vpop.f32.mrb[0].mxu0 }
 0x105   :  { %v499_v20 = vpop.f32.mrb[1].mxu0  ;;  %v117_v22 = vmul.f32 0.17677669, %v113_v19 }
 0x17b   :  { %v200_v21 = vpop.f32.mrb[0].mxu1 }
 0x17c   :  { %v510_v23 = vpop.f32.mrb[1].mxu1  ;;  %523 = vmatpush3.xpose.msk.msra.mxu1 %vm43_vm1, %v200_v21  ;;  %v282_v40 = vpop.f32.mrb[2].mxu0 }
 0x17d   :  { %527 = vmatprep.subr.mxu1 %v662_v1  ;;  %v521_v41 = vpop.f32.mrb[3].mxu0 }
 0x17f   :  { %525 = vmatmul.mubr.msk.f32.vlgmr.msra.gmra.mrb[2].mxu1 %vm43_vm1, %v117_v22 }
 0x180   :  { %529 = vmatprep.mubr.msk.f32.mxu1 %vm661_vm0, %v662_v1  ;;  %528 = vmatpush3.msra.mxu1 %v282_v40 }
 0x252   :  { %v358_v32 = vpop.f32.mrb[2].mxu1 }
 0x253   :  { %v526_v33 = vpop.f32.mrb[3].mxu1  ;;  %v363_v34 = vsel %vm362_vm2, %v358_v32, -inf }
 0x254   :  { %364 = vmax.xlane.f32.xlu0 %v363_v34 }
 0x2e1   :  { %v365_v35 = vpop.xlane.xlu0 %364 }
 0x2e2   :  { %v366_v36 = vsub.f32 %v358_v32, %v365_v35 }
 0x2e4   :  { %v367_v37 = vmul.f32 1.442695, %v366_v36 }
 0x2e6   :  { %580 = vpow2.f32 %v367_v37 }
 0x2f0   :  { %v581_v38 = vpop.eup %580 }
 0x2f1   :  { %v369_v39 = vsel %vm362_vm2, %v581_v38, 0.0 }
 0x2f2   :  { %370 = vadd.xlane.f32.xlu1 %v369_v39 }
 0x37f   :  { %v371_v42 = vpop.xlane.xlu1 %370 }
 0x380   :  { %582 = vrcp.f32 %v371_v42 }
 0x38a   :  { %v583_v43 = vpop.eup %582 }
 0x38b   :  { %v373_v44 = vmul.f32 %v583_v43, %v581_v38 }
 0x38d   :  { %530 = vmatmul.mubr.msk.f32.vlgmr.msra.gmra.mrb[4].mxu1 %vm362_vm2, %v373_v44 }
 0x460   :  { %v443_v45 = vpop.f32.mrb[4].mxu1 }
 0x461   :  { %447 = vst.msk [vmem:[#allocation7] sm:$0xff] %vm43_vm1, %v443_v45  ;;  %v531_v46 = vpop.f32.mrb[5].mxu1 }
 0x462   :  { %639 = shalt.err (!%p636_p6)
}
 0x463   :  { %s640_s12 = scalar_lea.hbm %s740_s2, 128 }
 0x464   :  { %p641_p7 = scmp.ne.s32.totalorder %s740_s2, %s640_s12  ;;  %p644_p8 = scmp.lt.u32.totalorder %s640_s12, %s740_s2 }
 0x466   :  { %p646_p9 = pnand %p644_p8, %p641_p7 }
 0x468   :  { %649 = shalt.err (!%p646_p9)
}
 0x469   :  { %457 = dma.vmem_to_hbm [thread:$0]  %s455_s8, 128, %s740_s2, [#allocation4]  }
 0x46a   :  { %654 = dma.done.wait [#allocation4], 128  }
 0x46b   :  { %655 = vsyncadd [#allocation4], 4294967168 }
 0x46c   :  { %461 = vsyncpa [#allocation3], 1 }
 0x46d   :  { %462 = vsyncpa [#allocation6], 1 }
 0x46e   :  { %463 = vsyncpa [#allocation4], 1 }

</bundles_post_ra>
